<compile_context>
chip_gen: v7x
topology: tpu7x:2x2x1
jax: 0.10.0
libtpu: 0.0.40
codegen_flags: <defaults>
</compile_context>

<pallas_src>
import numpy as np
import jax
import jax.numpy as jnp
from jax.experimental import pallas as pl
from jax.experimental.pallas import tpu as pltpu


def _round_up(x, m):
    return ((x + m - 1) // m) * m


def _feature_offsets(d_in):
    offs, acc = [], 0
    for d in d_in:
        offs.append(acc)
        acc += d
    return offs, acc


def _largest_divisor_leq(n, cap):
    """Largest divisor of n that is <= cap (n >= 1, cap >= 1). cap is small."""
    best = 1
    for k in range(1, min(n, cap) + 1):
        if n % k == 0:
            best = k
    return best


def _choose_tile_d(D, tile_d):
    """Lane-dense output block width; divides the 128-aligned total width."""
    d128 = _round_up(max(D, 1), 128)
    if tile_d is None:
        m = d128 // 128
        k = _largest_divisor_leq(m, 16)          # cap block width at 2048 lanes
        tile_d = 128 * k
    else:
        tile_d = _round_up(int(tile_d), 128)
    d_pad = _round_up(d128, tile_d)
    return tile_d, d_pad


def _choose_tile_b(B, F, tile_d, tile_b, align):
    """Batch tile: big (cap 1024), VMEM-budgeted, v7x-2TC friendly, and (when
    possible) a divisor of the aligned batch so no extra padding/slice."""
    if tile_b is None:
        # ~2x double-buffered output block + 2x input block + ~1 block of temps.
        bytes_per_row = 3 * tile_d * 4 + 2 * F * 4
        tile_b = (32 * 1024 * 1024) // max(bytes_per_row, 1)
    tile_b = max(align, min(1024, (int(tile_b) // align) * align))
    b_al = _round_up(B, align)
    if b_al >= 2 * align:
        # Keep >= 2 batch grid steps so the "parallel" axis spans both v7x TCs.
        tile_b = min(tile_b, max(align, (b_al // 2) // align * align))
    tile_b = min(tile_b, b_al)
    # Prefer a tile that exactly divides the aligned batch (no pad, no slice).
    t = align * _largest_divisor_leq(b_al // align, tile_b // align)
    if 4 * t >= tile_b:
        return t, b_al
    # Divisors are all tiny (e.g. prime batch/8): keep the big tile, pad+slice.
    return tile_b, _round_up(b_al, tile_b)


def _make_cmp_kernel(d_in, offs, tile_d, num_d_blocks):
    """VPU path (small F): per-feature compare, bool-OR accumulate, 1 convert.
    With a multi-block D grid, features are pruned per block via pl.when."""
    F = len(d_in)

    def kernel(idx_ref, out_ref):
        idx = idx_ref[...]                                           # (TB, F) int32
        iota = jax.lax.broadcasted_iota(jnp.int32, (1, tile_d), 1)   # (1, TD) row
        if num_d_blocks == 1:
            acc = None
            for i in range(F):                                       # F static, unrolled
                hit = iota == (idx[:, i:i + 1] + jnp.int32(offs[i]))  # (TB, TD) bool
                acc = hit if acc is None else (acc | hit)
            out_ref[...] = acc.astype(out_ref.dtype)                 # single convert + store
        else:
            col0 = pl.program_id(1) * tile_d
            out_ref[...] = jnp.zeros(out_ref.shape, dtype=out_ref.dtype)
            for i in range(F):
                lo = offs[i]
                hi = offs[i] + int(d_in[i])

                # Only features whose span intersects this D block do any work.
                @pl.when((col0 < hi) & (col0 + tile_d > lo))
                def _(i=i, lo=lo):
                    tgt = (idx[:, i:i + 1] + jnp.int32(lo)) - col0   # (TB, 1) local target
                    out_ref[...] += (iota == tgt).astype(out_ref.dtype)

    return kernel


def _mxu_kernel(idx_ref, sel_ref, loc_ref, out_ref):
    """MXU path (F >= ~5): T = idx @ S broadcasts each row's owning-feature
    index to that feature's columns; compare against static local iota."""
    idx_f = idx_ref[...].astype(jnp.float32)                             # (TB, Fp)
    t = jnp.dot(idx_f, sel_ref[...], preferred_element_type=jnp.float32)  # (TB, TD)
    out_ref[...] = (t == loc_ref[...]).astype(out_ref.dtype)


def one_hot_encoder_pallas(idx, d_in, *, tile_b=None, tile_d=None, use_mxu=None,
                           out_dtype=jnp.float32):
    """idx: (B, F) integer array, idx[:, i] in [0, d_in[i]).
    Returns (B, sum(d_in)) in out_dtype (default float32, matching PyTorch)."""
    B, F = idx.shape
    d_in = [int(d) for d in d_in]
    assert F == len(d_in)
    offs, D = _feature_offsets(d_in)

    if use_mxu is None:
        # The per-feature compare/OR chain costs ~2F VALU ops per output element
        # and saturates the 4 VALU slots around F~4-6 (v7x/v6e); the matmul
        # variant keeps the kernel HBM-store-bound for arbitrary F.
        use_mxu = F >= 5

    row_align = 8 if jnp.dtype(out_dtype).itemsize >= 4 else 16
    tile_d, D_pad = _choose_tile_d(D, tile_d)
    tile_b, B_pad = _choose_tile_b(B, F, tile_d, tile_b, row_align)
    nb = B_pad // tile_b
    nd = D_pad // tile_d

    idx32 = idx.astype(jnp.int32)
    if B_pad != B:
        idx32 = jnp.pad(idx32, ((0, B_pad - B), (0, 0)))

    out_spec = pl.BlockSpec((tile_b, tile_d), lambda i, j: (i, j))
    grid = (nb, nd)

    # VMEM limit from the actual live buffers (+ headroom), fits v7x's 64 MiB.
    out_bytes = jnp.dtype(out_dtype).itemsize
    out_blk = tile_b * tile_d * out_bytes
    in_blk = tile_b * _round_up(F, 8) * 4
    side_blk = (_round_up(F, 8) * tile_d * 4 + tile_d * 4) if use_mxu else 0
    vmem_limit = int(min(48 * 1024 * 1024,
                         max(16 * 1024 * 1024,
                             3 * out_blk + tile_b * tile_d * 4 + 2 * in_blk
                             + 2 * side_blk + 4 * 1024 * 1024)))

    cparams = pltpu.CompilerParams(
        dimension_semantics=("parallel", "parallel"),  # both axes independent
        vmem_limit_bytes=vmem_limit,
    )

    if use_mxu:
        # Pad the feature (contraction) dim to a multiple of 8; zero rows of S
        # contribute nothing, so this is exact.
        F_pad = _round_up(F, 8)
        idx_in = idx32 if F_pad == F else jnp.pad(idx32, ((0, 0), (0, F_pad - F)))
        sel = np.zeros((F_pad, D_pad), dtype=np.float32)
        loc = np.full((1, D_pad), -1.0, dtype=np.float32)   # pad cols never match
        for i, (o, d) in enumerate(zip(offs, d_in)):
            sel[i, o:o + d] = 1.0
            loc[0, o:o + d] = np.arange(d, dtype=np.float32)
        out = pl.pallas_call(
            _mxu_kernel,
            out_shape=jax.ShapeDtypeStruct((B_pad, D_pad), out_dtype),
            grid=grid,
            in_specs=[pl.BlockSpec((tile_b, F_pad), lambda i, j: (i, 0)),
                      pl.BlockSpec((F_pad, tile_d), lambda i, j: (0, j)),
                      pl.BlockSpec((1, tile_d), lambda i, j: (0, j))],
            out_specs=out_spec,
            compiler_params=cparams,
        )(idx_in, jnp.asarray(sel), jnp.asarray(loc))
    else:
        kernel = _make_cmp_kernel(d_in, offs, tile_d, nd)
        out = pl.pallas_call(
            kernel,
            out_shape=jax.ShapeDtypeStruct((B_pad, D_pad), out_dtype),
            grid=grid,
            in_specs=[pl.BlockSpec((tile_b, F), lambda i, j: (i, 0))],
            out_specs=out_spec,
            compiler_params=cparams,
        )(idx32)

    # Only slice (which re-streams the output) when padding was actually added.
    if B_pad != B or D_pad != D:
        out = out[:B, :D]
    return out


def _reference(idx, d_in):
    return jnp.concatenate(
        [jax.nn.one_hot(idx[:, i], int(d_in[i]), dtype=jnp.float32)
         for i in range(len(d_in))], axis=1)


def _make_idx(key, B, d_in):
    keys = jax.random.split(key, len(d_in))
    cols = [jax.random.randint(keys[i], (B, 1), 0, int(d_in[i]), dtype=jnp.int32)
            for i in range(len(d_in))]
    return jnp.concatenate(cols, axis=1)


if __name__ == "__main__":
    key = jax.random.PRNGKey(0)
    k1, k2, k3 = jax.random.split(key, 3)

    # 1) Small F -> VPU compare path, single D block (B=8, F=3).
    d_in_a = [3, 5, 4]
    idx_a = _make_idx(k1, 8, d_in_a)
    out_a = jax.block_until_ready(one_hot_encoder_pallas(idx_a, d_in_a))
    assert out_a.shape == (8, sum(d_in_a)) and out_a.dtype == jnp.float32
    np.testing.assert_allclose(np.asarray(out_a), np.asarray(_reference(idx_a, d_in_a)),
                               atol=0, rtol=0)

    # 2) F=6 -> MXU segment-select matmul path, 2x2 grid (batch x D blocks).
    d_in_b = [100, 60, 50, 20, 10, 7]
    idx_b = _make_idx(k2, 32, d_in_b)
    out_b = jax.block_until_ready(one_hot_encoder_pallas(idx_b, d_in_b, tile_d=128))
    np.testing.assert_allclose(np.asarray(out_b), np.asarray(_reference(idx_b, d_in_b)),
                               atol=0, rtol=0)

    # 3) Small F but multiple D blocks -> VPU path with per-block feature pruning.
    d_in_c = [100, 200]
    idx_c = _make_idx(k3, 24, d_in_c)
    out_c = jax.block_until_ready(one_hot_encoder_pallas(idx_c, d_in_c, tile_d=128))
    np.testing.assert_allclose(np.asarray(out_c), np.asarray(_reference(idx_c, d_in_c)),
                               atol=0, rtol=0)

    print("KERNEL_OK")
</pallas_src>

<mosaic_0001>
module attributes {stable_mosaic.version = 11 : i64} {
  func.func @kernel(%arg0: i32, %arg1: i32, %arg2: memref<8x3xi32, #tpu.memory_space<vmem>>, %arg3: memref<8x128xf32, #tpu.memory_space<vmem>>) attributes {dimension_semantics = [#tpu.dimension_semantics<parallel>, #tpu.dimension_semantics<parallel>], iteration_bounds = array<i64: 1, 1>, scalar_prefetch = 0 : i64, scratch_operands = 0 : i64, tpu.core_type = #tpu.core_type<tc>, window_params = [{transform_indices = @transform_0, window_bounds = array<i64: 8, 3>}, {transform_indices = @transform_1, window_bounds = array<i64: 8, 128>}]} {
    %c0 = arith.constant 0 : index
    %c0_0 = arith.constant 0 : index
    %0 = vector.load %arg2[%c0, %c0_0] : memref<8x3xi32, #tpu.memory_space<vmem>>, vector<8x3xi32>
    %1 = tpu.iota {dimensions = array<i32: 1>} : vector<1x128xi32>
    %2 = vector.extract_strided_slice %0 {offsets = [0, 0], sizes = [8, 1], strides = [1, 1]} : vector<8x3xi32> to vector<8x1xi32>
    %c0_i32 = arith.constant 0 : i32
    %3 = vector.broadcast %c0_i32 : i32 to vector<8x1xi32>
    %4 = arith.addi %2, %3 : vector<8x1xi32>
    %5 = vector.broadcast %1 : vector<1x128xi32> to vector<8x128xi32>
    %6 = vector.broadcast %4 : vector<8x1xi32> to vector<8x128xi32>
    %7 = arith.cmpi eq, %5, %6 : vector<8x128xi32>
    %8 = vector.extract_strided_slice %0 {offsets = [0, 1], sizes = [8, 1], strides = [1, 1]} : vector<8x3xi32> to vector<8x1xi32>
    %c3_i32 = arith.constant 3 : i32
    %9 = vector.broadcast %c3_i32 : i32 to vector<8x1xi32>
    %10 = arith.addi %8, %9 : vector<8x1xi32>
    %11 = vector.broadcast %1 : vector<1x128xi32> to vector<8x128xi32>
    %12 = vector.broadcast %10 : vector<8x1xi32> to vector<8x128xi32>
    %13 = arith.cmpi eq, %11, %12 : vector<8x128xi32>
    %14 = arith.ori %7, %13 : vector<8x128xi1>
    %15 = vector.extract_strided_slice %0 {offsets = [0, 2], sizes = [8, 1], strides = [1, 1]} : vector<8x3xi32> to vector<8x1xi32>
    %c8_i32 = arith.constant 8 : i32
    %16 = vector.broadcast %c8_i32 : i32 to vector<8x1xi32>
    %17 = arith.addi %15, %16 : vector<8x1xi32>
    %18 = vector.broadcast %1 : vector<1x128xi32> to vector<8x128xi32>
    %19 = vector.broadcast %17 : vector<8x1xi32> to vector<8x128xi32>
    %20 = arith.cmpi eq, %18, %19 : vector<8x128xi32>
    %21 = arith.ori %14, %20 : vector<8x128xi1>
    %22 = arith.extui %21 : vector<8x128xi1> to vector<8x128xi32>
    %23 = arith.sitofp %22 : vector<8x128xi32> to vector<8x128xf32>
    %c0_1 = arith.constant 0 : index
    %c0_2 = arith.constant 0 : index
    %24 = vector.load %arg3[%c0_1, %c0_2] : memref<8x128xf32, #tpu.memory_space<vmem>>, vector<8x128xf32>
    tpu.vector_store %arg3[%c0_1, %c0_2], %23 {strides = array<i32>} : memref<8x128xf32, #tpu.memory_space<vmem>>, vector<8x128xf32>,
    return
  }
  func.func @transform_0(%arg0: i32, %arg1: i32) -> (i32, i32) {
    %c0_i32 = arith.constant 0 : i32
    %c0_i32_0 = arith.constant 0 : i32
    return %arg0, %c0_i32 : i32, i32
  }
  func.func @transform_1(%arg0: i32, %arg1: i32) -> (i32, i32) {
    %c0_i32 = arith.constant 0 : i32
    return %arg0, %arg1 : i32, i32
  }
}

</mosaic_0001>

<bundles_post_ra>
// kernel: tpu_custom_call.1
= control target key start
LH: loop header
LB: loop body
LE: loop exit
PB: predicated region body
PF: predicated region fallthrough
CT: control target
= control target key end

     0   :  { %s109_s0 = inlined_call_operand.vmem [shape: s32[8,3], index: 0, kind: input, shape index: {}]   ;;  %s110_s1 = inlined_call_operand.hbm [shape: f32[8,128], index: 1, kind: output, shape index: {}]  }
   0x1   :  { %v9_v0 = vld [vmem:[%s109_s0] sm:$0xff] }
   0x2   :  { %6 = vsyncpa [#allocation3], 0  ;;  %v79_v1 = vmov 0   ;;  %v80_v2 = vmov 2   ;;  %v22_v3 = vadd.s32 8, %v9_v0  ;;  %v16_v4 = vadd.s32 3, %v9_v0 }
   0x3   :  { %51 = vset.pattern.permute.xlu0 %v79_v1  ;;  %53 = vset.pattern.permute.xlu1 %v80_v2  ;;  %v81_v5 = vmov 1   ;;  %v10_v6 = vlaneseq  ;;  %s82_s0 = smov [#allocation2]   ;;  %v83_v11 = vmov 0.0  }
   0x4   :  { %13 = vperm.xlu0 %51, %v9_v0   ;;  %24 = vperm.xlu1 %53, %v22_v3   ;;  %s37_s8 = sshll.u32 %s82_s0, 4  ;;  %s38_s8 = int_to_ptr.vmem [resolvable:$true] %s37_s8 }
   0x5   :  { %v11_v8 = vand.u32 127, %v10_v6  ;;  %s55_s9 = scalar_lea.vmem %s38_s8, 128  ;;  %p60_p1 = scmp.lt.s32.totalorder %s38_s8, %s38_s8 }
   0x6   :  { %p56_p0 = scmp.ne.s32.totalorder %s38_s8, %s55_s9  ;;  %p61_p2 = scmp.lt.s32.totalorder %s55_s9, %s55_s9 }
   0x8   :  { %52 = vset.pattern.permute.xlu0 %v81_v5  ;;  %p62_p3 = por %p61_p2, %p60_p1 }
   0x9   :  { %18 = vperm.xlu0 %52, %v16_v4  }
   0xa   :  { %p63_p4 = pnand %p62_p3, %p56_p0 }
   0xd   :  { %54 = vset.pattern.permute.xlu0 %v80_v2 }
  0x83   :  { %v14_v7 = vpop.permute.xlu0 %13  ;;  %v25_v9 = vpop.permute.xlu1 %24 }
  0x84   :  { %vm26_vm0 = vcmp.eq.s32.totalorder %v11_v8, %v25_v9  ;;  %vm15_vm1 = vcmp.eq.s32.totalorder %v11_v8, %v14_v7 }
  0x88   :  { %v19_v10 = vpop.permute.xlu0 %18 }
  0x89   :  { %vm20_vm2 = vcmp.eq.s32.totalorder %v11_v8, %v19_v10 }
  0x8a   :  { %vm21_vm3 = vmor %vm15_vm1, %vm20_vm2 }
  0x8b   :  { %vm27_vm4 = vmor %vm21_vm3, %vm26_vm0 }
  0x8c   :  { %v45_v12 = vsel %vm27_vm4, 1.0, %v83_v11 }
  0x8d   :  { %30 = vst [vmem:[#allocation2] sm:$0xff] %v45_v12 }
  0x8e   :  { %66 = shalt.err (!%p63_p4)
}
  0x8f   :  { %s67_s12 = scalar_lea.hbm %s110_s1, 128 }
  0x90   :  { %p68_p5 = scmp.ne.s32.totalorder %s110_s1, %s67_s12  ;;  %p71_p6 = scmp.lt.u32.totalorder %s67_s12, %s110_s1 }
  0x92   :  { %p73_p7 = pnand %p71_p6, %p68_p5 }
  0x94   :  { %76 = shalt.err (!%p73_p7)
}
  0x95   :  { %40 = dma.vmem_to_hbm [thread:$0]  %s38_s8, 128, %s110_s1, [#allocation3]  }
  0x96   :  { %77 = dma.done.wait [#allocation3], 128  }
  0x97   :  { %78 = vsyncadd [#allocation3], 4294967168 }
  0x98   :  { %44 = vsyncpa [#allocation3], 1 }

</bundles_post_ra>
